<compile_context>
chip_gen: v6e
topology: v6e:2x2x1
jax: 0.10.0
libtpu: 0.0.40
codegen_flags: <defaults>
</compile_context>

<pallas_src>
import jax
import jax.numpy as jnp
from jax.experimental import pallas as pl
from jax.experimental.pallas import tpu as pltpu

EPS = 1e-5


# ----------------------------------------------------------------------------
# Tiling / VMEM planning
# ----------------------------------------------------------------------------
def _round_up(n, m):
    return ((n + m - 1) // m) * m


def _vmem_capacity_bytes():
    """Per-TensorCore VMEM capacity; conservative (v7x) fallback if unknown."""
    try:
        return int(pltpu.get_tpu_info().vmem_capacity_bytes)
    except Exception:
        return 64 << 20


def _choose_tile(B, F, *, bytes_per_elem, budget_bytes, max_tf=1 << 17):
    """Largest 128-multiple divisor of F such that one (B, TF) tile fits the
    per-buffer budget, TF <= max_tf, and (when F >= 256) TF <= F//2 so the
    grid has at least two steps (megacore sharding + pipelining).
    F must already be a multiple of 128 (the wrapper pads)."""
    cap = budget_bytes // max(1, B * bytes_per_elem)
    cap = min(cap, max_tf, F)
    if F >= 256:
        cap = min(cap, F // 2)
    cap = max(128, (cap // 128) * 128)
    t = cap
    while t >= 128:
        if F % t == 0:
            return t
        t -= 128
    return 128


def _tile_plan(B, F_padded, itemsize):
    """Returns (TF, vmem_limit_bytes) with generation-aware VMEM accounting.

    Live VMEM per step ~ 2x (B,TF) input bufs + 2x (B,TF) output bufs
    + ~3 tile-sized elementwise temps + small (2|4, TF) row buffers,
    so the per-tile budget is capacity/12 and the scoped limit is 3/4 capacity.
    """
    cap_bytes = _vmem_capacity_bytes()
    per_tile_budget = max(cap_bytes // 12, 1 << 20)
    vmem_limit = min(cap_bytes * 3 // 4, 128 << 20)
    tf = _choose_tile(B, F_padded, bytes_per_elem=max(itemsize, 4),
                      budget_bytes=per_tile_budget)
    return tf, vmem_limit


# ----------------------------------------------------------------------------
# Kernels
# ----------------------------------------------------------------------------
def _norm_kernel(x_ref, wb_ref, y_ref, stats_ref):
    x = x_ref[...].astype(jnp.float32)                         # (B, TF) f32
    wb = wb_ref[...]                                           # (2, TF) f32
    w = wb[0:1, :]
    b = wb[1:2, :]
    mean = jnp.mean(x, axis=0, keepdims=True)                  # (1, TF)
    mad = jnp.mean(jnp.abs(x - mean), axis=0, keepdims=True)   # (1, TF)
    std = mad + EPS                                            # (1, TF)
    inv_std = 1.0 / std                  # per-row divide, amortized over B
    s = w * inv_std                                            # (1, TF)
    t = b - mean * s                                           # (1, TF)
    y_ref[...] = (x * s + t).astype(y_ref.dtype)   # 2 VPU ops/elem hot path
    stats_ref[...] = jnp.concatenate([mean, std], axis=0)      # (2, TF) f32


def _denorm_kernel(y_ref, p_ref, x_ref):
    y = y_ref[...].astype(jnp.float32)                         # (B, TF) f32
    p = p_ref[...]                                             # (4, TF) f32
    mean = p[0:1, :]
    std = p[1:2, :]
    w = p[2:3, :]
    b = p[3:4, :]
    inv_w = 1.0 / (w + EPS * EPS)        # per-row divide, amortized over B
    s = std * inv_w                                            # (1, TF)
    t = mean - b * s                                           # (1, TF)
    x_ref[...] = (y * s + t).astype(x_ref.dtype)


# ----------------------------------------------------------------------------
# Wrappers
# ----------------------------------------------------------------------------
@jax.jit
def revin_norm(x, weight, bias):
    """x: (B, L, C); weight/bias: (C,). Returns (y, mean(1,L,C) f32, stdev(L,C) f32)
    matching PyTorch RevIN 'norm' mode (statistics reduced over the batch axis)."""
    B, L, C = x.shape
    F = L * C
    Fp = _round_up(F, 128)
    pad = Fp - F
    TF, vmem_limit = _tile_plan(B, Fp, x.dtype.itemsize)
    grid = (Fp // TF,)

    xf = x.reshape(B, F)
    # TODO(synk): cache the (2, F) weight/bias broadcast across calls when C
    # stays fixed; rebuilt per call here (tiny vs. B*F x/y traffic).
    wf = jnp.tile(weight.astype(jnp.float32), L)
    bf = jnp.tile(bias.astype(jnp.float32), L)
    if pad:
        xf = jnp.pad(xf, ((0, 0), (0, pad)))
        wf = jnp.pad(wf, (0, pad), constant_values=1.0)
        bf = jnp.pad(bf, (0, pad))
    wb = jnp.stack([wf, bf], axis=0)                            # (2, Fp) f32

    mat_spec = pl.BlockSpec((B, TF), lambda i: (0, i))
    row2_spec = pl.BlockSpec((2, TF), lambda i: (0, i))

    itemsize = x.dtype.itemsize
    cost = pl.CostEstimate(
        flops=6 * B * Fp,
        transcendentals=0,
        bytes_accessed=2 * B * Fp * itemsize + 4 * Fp * 4,
    )

    y, stats = pl.pallas_call(
        _norm_kernel,
        out_shape=(
            jax.ShapeDtypeStruct((B, Fp), x.dtype),
            jax.ShapeDtypeStruct((2, Fp), jnp.float32),
        ),
        grid=grid,
        in_specs=[mat_spec, row2_spec],
        out_specs=(mat_spec, row2_spec),
        compiler_params=pltpu.CompilerParams(
            dimension_semantics=("parallel",),
            vmem_limit_bytes=vmem_limit,
        ),
        cost_estimate=cost,
    )(xf, wb)

    y = y[:, :F].reshape(B, L, C)
    stats = stats[:, :F]
    mean = stats[0].reshape(1, L, C)
    std = stats[1].reshape(L, C)
    return y, mean, std


@jax.jit
def revin_denorm(y, mean, std, weight, bias):
    """Inverse transform ('denorm' mode) using statistics from revin_norm."""
    B, L, C = y.shape
    F = L * C
    Fp = _round_up(F, 128)
    pad = Fp - F
    TF, vmem_limit = _tile_plan(B, Fp, y.dtype.itemsize)
    grid = (Fp // TF,)

    yf = y.reshape(B, F)
    meanf = mean.reshape(F).astype(jnp.float32)
    stdf = std.reshape(F).astype(jnp.float32)
    wf = jnp.tile(weight.astype(jnp.float32), L)
    bf = jnp.tile(bias.astype(jnp.float32), L)
    if pad:
        yf = jnp.pad(yf, ((0, 0), (0, pad)))
        meanf = jnp.pad(meanf, (0, pad))
        stdf = jnp.pad(stdf, (0, pad), constant_values=1.0)
        wf = jnp.pad(wf, (0, pad), constant_values=1.0)
        bf = jnp.pad(bf, (0, pad))
    params = jnp.stack([meanf, stdf, wf, bf], axis=0)           # (4, Fp) f32

    mat_spec = pl.BlockSpec((B, TF), lambda i: (0, i))
    row4_spec = pl.BlockSpec((4, TF), lambda i: (0, i))

    itemsize = y.dtype.itemsize
    cost = pl.CostEstimate(
        flops=2 * B * Fp + 6 * Fp,
        transcendentals=0,
        bytes_accessed=2 * B * Fp * itemsize + 4 * Fp * 4,
    )

    x = pl.pallas_call(
        _denorm_kernel,
        out_shape=jax.ShapeDtypeStruct((B, Fp), y.dtype),
        grid=grid,
        in_specs=[mat_spec, row4_spec],
        out_specs=mat_spec,
        compiler_params=pltpu.CompilerParams(
            dimension_semantics=("parallel",),
            vmem_limit_bytes=vmem_limit,
        ),
        cost_estimate=cost,
    )(yf, params)
    return x[:, :F].reshape(B, L, C)


# ----------------------------------------------------------------------------
# Plain-JAX references (PyTorch semantics)
# ----------------------------------------------------------------------------
def _ref_norm(x, weight, bias):
    mean = jnp.mean(x, axis=0, keepdims=True)
    std = jnp.mean(jnp.abs(x - mean), axis=0) + EPS
    y = (x - mean) / std
    y = y * weight + bias
    return y, mean, std


def _ref_denorm(y, mean, std, weight, bias):
    x = (y - bias) / (weight + EPS * EPS)
    return x * std + mean


if __name__ == "__main__":
    key = jax.random.PRNGKey(0)
    # Small, representative shape. F = L*C = 288 is NOT a multiple of 128 on
    # purpose: exercises the pad-to-lane-dense path (Fp = 384 -> grid of >= 2
    # tiles, so pipelining / megacore sharding are active).
    B, L, C = 4, 12, 24
    x = jax.random.normal(key, (B, L, C), dtype=jnp.float32) * 2.0 + 0.5

    # Deterministic, non-trivial affine params (PyTorch init ones/zeros is a
    # special case; non-trivial values exercise the affine math).
    weight = 1.0 + 0.1 * jnp.cos(jnp.arange(C, dtype=jnp.float32))
    bias = 0.05 * jnp.sin(jnp.arange(C, dtype=jnp.float32))

    # mode='norm'
    y, mean, std = revin_norm(x, weight, bias)
    jax.block_until_ready(y)

    # mode='denorm'
    x_rec = revin_denorm(y, mean, std, weight, bias)
    jax.block_until_ready(x_rec)

    # Check against plain-JAX reference of the PyTorch semantics.
    y_ref, mean_ref, std_ref = _ref_norm(x, weight, bias)
    x_rec_ref = _ref_denorm(y_ref, mean_ref, std_ref, weight, bias)

    assert jnp.allclose(y, y_ref, atol=1e-5, rtol=1e-5)
    assert jnp.allclose(mean, mean_ref, atol=1e-6, rtol=1e-6)
    assert jnp.allclose(std, std_ref, atol=1e-6, rtol=1e-6)
    assert jnp.allclose(x_rec, x_rec_ref, atol=1e-5, rtol=1e-5)
    assert jnp.allclose(x_rec, x, atol=1e-3, rtol=1e-3)

    print("KERNEL_OK")
</pallas_src>

<mosaic_0001>
module attributes {stable_mosaic.version = 11 : i64} {
  func.func @_norm_kernel(%arg0: i32, %arg1: memref<4x128xf32, #tpu.memory_space<vmem>>, %arg2: memref<2x128xf32, #tpu.memory_space<vmem>>, %arg3: memref<4x128xf32, #tpu.memory_space<vmem>>, %arg4: memref<2x128xf32, #tpu.memory_space<vmem>>) attributes {dimension_semantics = [#tpu.dimension_semantics<parallel>], iteration_bounds = array<i64: 3>, scalar_prefetch = 0 : i64, scratch_operands = 0 : i64, tpu.core_type = #tpu.core_type<tc>, window_params = [{transform_indices = @transform_0, window_bounds = array<i64: 4, 128>}, {transform_indices = @transform_1, window_bounds = array<i64: 2, 128>}, {transform_indices = @transform_2, window_bounds = array<i64: 4, 128>}, {transform_indices = @transform_3, window_bounds = array<i64: 2, 128>}]} {
    %c0 = arith.constant 0 : index
    %c0_0 = arith.constant 0 : index
    %0 = vector.load %arg1[%c0, %c0_0] : memref<4x128xf32, #tpu.memory_space<vmem>>, vector<4x128xf32>
    %c0_1 = arith.constant 0 : index
    %c0_2 = arith.constant 0 : index
    %1 = vector.load %arg2[%c0_1, %c0_2] : memref<2x128xf32, #tpu.memory_space<vmem>>, vector<2x128xf32>
    %2 = vector.extract_strided_slice %1 {offsets = [0, 0], sizes = [1, 128], strides = [1, 1]} : vector<2x128xf32> to vector<1x128xf32>
    %3 = vector.extract_strided_slice %1 {offsets = [1, 0], sizes = [1, 128], strides = [1, 1]} : vector<2x128xf32> to vector<1x128xf32>
    %cst = arith.constant dense<0.000000e+00> : vector<128xf32>
    %4 = vector.multi_reduction <add>, %0, %cst [0] : vector<4x128xf32> to vector<128xf32>
    %5 = vector.shape_cast %4 : vector<128xf32> to vector<1x128xf32>
    %cst_3 = arith.constant 4.000000e+00 : f32
    %6 = vector.broadcast %cst_3 : f32 to vector<1x128xf32>
    %7 = arith.divf %5, %6 : vector<1x128xf32>
    %8 = vector.broadcast %7 : vector<1x128xf32> to vector<4x128xf32>
    %9 = arith.subf %0, %8 : vector<4x128xf32>
    %10 = math.absf %9 : vector<4x128xf32>
    %cst_4 = arith.constant dense<0.000000e+00> : vector<128xf32>
    %11 = vector.multi_reduction <add>, %10, %cst_4 [0] : vector<4x128xf32> to vector<128xf32>
    %12 = vector.shape_cast %11 : vector<128xf32> to vector<1x128xf32>
    %cst_5 = arith.constant 4.000000e+00 : f32
    %13 = vector.broadcast %cst_5 : f32 to vector<1x128xf32>
    %14 = arith.divf %12, %13 : vector<1x128xf32>
    %cst_6 = arith.constant 9.99999974E-6 : f32
    %15 = vector.broadcast %cst_6 : f32 to vector<1x128xf32>
    %16 = arith.addf %14, %15 : vector<1x128xf32>
    %cst_7 = arith.constant 1.000000e+00 : f32
    %17 = vector.broadcast %cst_7 : f32 to vector<1x128xf32>
    %18 = arith.divf %17, %16 : vector<1x128xf32>
    %19 = arith.mulf %2, %18 : vector<1x128xf32>
    %20 = arith.mulf %7, %19 : vector<1x128xf32>
    %21 = arith.subf %3, %20 : vector<1x128xf32>
    %22 = vector.broadcast %19 : vector<1x128xf32> to vector<4x128xf32>
    %23 = arith.mulf %0, %22 : vector<4x128xf32>
    %24 = vector.broadcast %21 : vector<1x128xf32> to vector<4x128xf32>
    %25 = arith.addf %23, %24 : vector<4x128xf32>
    %c0_8 = arith.constant 0 : index
    %c0_9 = arith.constant 0 : index
    %26 = vector.load %arg3[%c0_8, %c0_9] : memref<4x128xf32, #tpu.memory_space<vmem>>, vector<4x128xf32>
    tpu.vector_store %arg3[%c0_8, %c0_9], %25 {strides = array<i32>} : memref<4x128xf32, #tpu.memory_space<vmem>>, vector<4x128xf32>,
    %27 = tpu.concatenate %7, %16 in 0 : vector<1x128xf32>, vector<1x128xf32> -> vector<2x128xf32>
    %c0_10 = arith.constant 0 : index
    %c0_11 = arith.constant 0 : index
    %28 = vector.load %arg4[%c0_10, %c0_11] : memref<2x128xf32, #tpu.memory_space<vmem>>, vector<2x128xf32>
    tpu.vector_store %arg4[%c0_10, %c0_11], %27 {strides = array<i32>} : memref<2x128xf32, #tpu.memory_space<vmem>>, vector<2x128xf32>,
    return
  }
  func.func @transform_0(%arg0: i32) -> (i32, i32) {
    %c0_i32 = arith.constant 0 : i32
    %c0_i32_0 = arith.constant 0 : i32
    return %c0_i32, %arg0 : i32, i32
  }
  func.func @transform_1(%arg0: i32) -> (i32, i32) {
    %c0_i32 = arith.constant 0 : i32
    %c0_i32_0 = arith.constant 0 : i32
    return %c0_i32, %arg0 : i32, i32
  }
  func.func @transform_2(%arg0: i32) -> (i32, i32) {
    %c0_i32 = arith.constant 0 : i32
    %c0_i32_0 = arith.constant 0 : i32
    return %c0_i32, %arg0 : i32, i32
  }
  func.func @transform_3(%arg0: i32) -> (i32, i32) {
    %c0_i32 = arith.constant 0 : i32
    %c0_i32_0 = arith.constant 0 : i32
    return %c0_i32, %arg0 : i32, i32
  }
}

</mosaic_0001>

<bundles_post_ra>
// kernel: tile.18
= control target key start
LH: loop header
LB: loop body
LE: loop exit
PB: predicated region body
PF: predicated region fallthrough
CT: control target
= control target key end

     0   :  { %s28_s0 = inlined_call_operand.vmem [shape: f32[24], index: 0, kind: input, shape index: {}]   ;;  %s29_s1 = inlined_call_operand.vmem [shape: f32[12,24], index: 1, kind: output, shape index: {}]  }
   0x1   :  { %v4_v0 = vld [vmem:[%s28_s0] ss:$0 sm:$0xff] }
   0x2   :  { %5 = vst [vmem:[%s29_s1] sm:$0xff] %v4_v0  ;;  %8 = vst [vmem:[%s29_s1 + $0x8] sm:$0xff] %v4_v0 }

// kernel: tile.19
= control target key start
LH: loop header
LB: loop body
LE: loop exit
PB: predicated region body
PF: predicated region fallthrough
CT: control target
= control target key end

     0   :  { %vm9_vm0 = vcmask 64512   ;;  %vm13_vm1 = vcmask 130048   ;;  %s123_s14 = smov 120   ;;  %s124_s15 = smov 96   ;;  %vm3_vm2 = vcmask 195584   ;;  %vm16_vm3 = vcmask 1048512   ;;  %s193_s0 = inlined_call_operand.vmem [shape: f32[12,24], index: 0, kind: input, shape index: {}]   ;;  %s194_s1 = inlined_call_operand.vmem [shape: f32[288], index: 1, kind: output, shape index: {}]  }
   0x1   :  { %v99_v0 = vld [vmem:[%s193_s0 + $0x5] sm:$0x1]   ;;  %v103_v3 = vld [vmem:[%s193_s0 + $0x4] sm:$0x1]   ;;  %v101_v4 = vld [vmem:[%s193_s0 + $0xa] sm:$0x1]  }
   0x2   :  { %v100_v1 = vld [vmem:[%s193_s0 + $0x5] sm:$0x1]   ;;  %34 = vrot.lane.b32.xlu1 %v103_v3, %s124_s15  ;;  %v102_v5 = vld [vmem:[%s193_s0 + $0xa] sm:$0x1]   ;;  %v104_v7 = vld [vmem:[%s193_s0 + $0x9] sm:$0x1]  }
   0x3   :  { %v10_v2 = vsel %vm9_vm0, %v100_v1, %v99_v0  ;;  %v23_v6 = vsel %vm13_vm1, %v102_v5, %v101_v4  ;;  %s125_s20 = smov 112   ;;  %s126_s21 = smov 88   ;;  %v105_v8 = vld [vmem:[%s193_s0 + $0x3] sm:$0x1]   ;;  %v2_v9 = vld [vmem:[%s193_s0] sm:$0x1]  }
   0x4   :  { %11 = vrot.lane.b32.xlu0 %v10_v2, %s123_s14  ;;  %v106_v10 = vld [vmem:[%s193_s0 + $0x8] sm:$0x1]   ;;  %4 = vst.msk [vmem:[#allocation0] sm:$0x1] %vm3_vm2, %v2_v9   ;;  %s127_s28 = smov 72   ;;  %s128_s29 = smov 64  }
   0x5   :  { %v107_v11 = vld [vmem:[%s193_s0 + $0x2] sm:$0x1]   ;;  %v108_v12 = vld [vmem:[%s193_s0 + $0x7] sm:$0x1]   ;;  %s129_s5 = smov 48   ;;  %s130_s6 = smov 40  }
   0x6   :  { %40 = vrot.lane.b32.xlu1 %v104_v7, %s126_s21  ;;  %v109_v13 = vld [vmem:[%s193_s0 + $0x1] sm:$0x1]   ;;  %v110_v14 = vld [vmem:[%s193_s0 + $0x6] sm:$0x1]   ;;  %s131_s11 = smov 24   ;;  %s132_s12 = smov 16  }
   0x7   :  { %v111_v15 = vld [vmem:[%s193_s0 + $0xb] sm:$0x1]   ;;  %s133_s0 = smov 8   ;;  %vm36_vm4 = vcmask 982784   ;;  %vm29_vm5 = vcmask 1048448   ;;  %vm42_vm6 = vcmask 917184  }
   0x8   :  { %24 = vrot.lane.b32.xlu0 %v23_v6, %s125_s20  ;;  %vm49_vm7 = vcmask 785984   ;;  %vm55_vm8 = vcmask 720384   ;;  %vm62_vm9 = vcmask 589184   ;;  %vm68_vm10 = vcmask 523584  }
   0x9   :  { %vm75_vm11 = vcmask 392384   ;;  %vm81_vm12 = vcmask 326784   ;;  %vm88_vm13 = vcmask 261184  }
   0xa   :  { %53 = vrot.lane.b32.xlu1 %v106_v10, %s128_s29 }
   0xc   :  { %47 = vrot.lane.b32.xlu0 %v105_v8, %s127_s28 }
   0xe   :  { %66 = vrot.lane.b32.xlu1 %v108_v12, %s130_s6 }
  0x10   :  { %60 = vrot.lane.b32.xlu0 %v107_v11, %s129_s5 }
  0x12   :  { %79 = vrot.lane.b32.xlu1 %v110_v14, %s132_s12 }
  0x14   :  { %73 = vrot.lane.b32.xlu0 %v109_v13, %s131_s11 }
  0x18   :  { %86 = vrot.lane.b32.xlu0 %v111_v15, %s133_s0 }
  0x74   :  { %v35_v17 = vpop.permute.xlu1 %34  }
  0x76   :  { %v12_v16 = vpop.permute.xlu0 %11  }
  0x77   :  { %15 = vst.msk [vmem:[#allocation0 + $0x1] sm:$0x1] %vm13_vm1, %v12_v16  }
  0x78   :  { %17 = vst.msk [vmem:[#allocation0] sm:$0x1] %vm16_vm3, %v12_v16   ;;  %v41_v19 = vpop.permute.xlu1 %40  }
  0x79   :  { %37 = vst.msk [vmem:[#allocation0] sm:$0x1] %vm36_vm4, %v35_v17  }
  0x7a   :  { %v25_v18 = vpop.permute.xlu0 %24  }
  0x7b   :  { %28 = vst.msk [vmem:[#allocation0 + $0x2] sm:$0x1] %vm9_vm0, %v25_v18  }
  0x7c   :  { %31 = vst.msk [vmem:[#allocation0 + $0x1] sm:$0x1] %vm29_vm5, %v25_v18   ;;  %v54_v21 = vpop.permute.xlu1 %53  }
  0x7d   :  { %44 = vst.msk [vmem:[#allocation0 + $0x1] sm:$0x1] %vm42_vm6, %v41_v19  }
  0x7e   :  { %v48_v20 = vpop.permute.xlu0 %47   ;;  %57 = vst.msk [vmem:[#allocation0 + $0x1] sm:$0x1] %vm55_vm8, %v54_v21  }
  0x7f   :  { %50 = vst.msk [vmem:[#allocation0] sm:$0x1] %vm49_vm7, %v48_v20  }
  0x80   :  { %v67_v23 = vpop.permute.xlu1 %66  }
  0x81   :  { %70 = vst.msk [vmem:[#allocation0 + $0x1] sm:$0x1] %vm68_vm10, %v67_v23  }
  0x82   :  { %v61_v22 = vpop.permute.xlu0 %60  }
  0x83   :  { %63 = vst.msk [vmem:[#allocation0] sm:$0x1] %vm62_vm9, %v61_v22  }
  0x84   :  { %v80_v25 = vpop.permute.xlu1 %79  }
  0x85   :  { %83 = vst.msk [vmem:[#allocation0 + $0x1] sm:$0x1] %vm81_vm12, %v80_v25  }
  0x86   :  { %v74_v24 = vpop.permute.xlu0 %73  }
  0x87   :  { %76 = vst.msk [vmem:[#allocation0] sm:$0x1] %vm75_vm11, %v74_v24  }
  0x8a   :  { %v87_v26 = vpop.permute.xlu0 %86  }
  0x8b   :  { %90 = vst.msk [vmem:[#allocation0 + $0x2] sm:$0x1] %vm88_vm13, %v87_v26  }
  0x92   :  { %v95_v27 = vld [vmem:[#allocation0] sm:$0xf] }
  0x93   :  { %98 = vst [vmem:[%s194_s1] sm:$0xf] %v95_v27 }

// kernel: squeeze.0
= control target key start
LH: loop header
LB: loop body
LE: loop exit
PB: predicated region body
PF: predicated region fallthrough
CT: control target
= control target key end

     0   :  { %s273_s0 = inlined_call_operand.vmem [shape: f32[288], index: 0, kind: input, shape index: {}]   ;;  %s274_s1 = inlined_call_operand.hbm [shape: f32[1,12,24], index: 1, kind: output, shape index: {}]  }
   0x1   :  { %v6_v0 = vld [vmem:[%s273_s0] sm:$0xf] }
   0x2   :  { %7 = vst [vmem:[#allocation3] sm:$0xf] %v6_v0 }
   0x3   :  { %2 = vsyncpa [#allocation1], 0  ;;  %vm74_vm0 = vcmask 916480   ;;  %s235_s0 = smov 104   ;;  %s236_s8 = smov 120   ;;  %vm87_vm1 = vcmask 982016  }
   0x4   :  { %s237_s9 = smov 16   ;;  %s238_s10 = smov 112   ;;  %vm9_vm2 = vcmask 195584   ;;  %vm78_vm3 = vcmask 130048   ;;  %vm81_vm4 = vcmask 195712   ;;  %vm91_vm5 = vcmask 64512  }
   0x5   :  { %s239_s11 = smov 8   ;;  %s240_s12 = smov 88   ;;  %vm94_vm6 = vcmask 195648  }
   0x6   :  { %s241_s13 = smov 80   ;;  %s242_s14 = smov 64  }
   0x7   :  { %s243_s15 = smov 56   ;;  %s244_s16 = smov 40  }
   0x8   :  { %s245_s17 = smov 32   ;;  %s246_s18 = smov [#allocation0]  }
   0x9   :  { %v25_v1 = vld [vmem:[#allocation3] sm:$0x1]   ;;  %v71_v2 = vld [vmem:[#allocation3 + $0x1] sm:$0x1]   ;;  %v73_v3 = vld [vmem:[#allocation3 + $0x2] sm:$0x1]  }
   0xa   :  { %26 = vrot.lane.b32.xlu0 %v25_v1, %s235_s0  ;;  %v12_v4 = vld [vmem:[#allocation3 + $0x2] sm:$0x1]   ;;  %v75_v5 = vsel %vm74_vm0, %v73_v3, %v71_v2  ;;  %v84_v6 = vld [vmem:[#allocation3] sm:$0x1]   ;;  %v86_v7 = vld [vmem:[#allocation3 + $0x1] sm:$0x1]  }
   0xb   :  { %13 = vrot.lane.b32.xlu1 %v12_v4, %s236_s8  ;;  %v19_v8 = vld [vmem:[#allocation3 + $0x1] sm:$0x1]   ;;  %v88_v9 = vsel %vm87_vm1, %v86_v7, %v84_v6  ;;  %v8_v11 = vld [vmem:[#allocation3] sm:$0x1]   ;;  %s185_s19 = sshll.u32 %s246_s18, 4  ;;  %s186_s19 = int_to_ptr.vmem [resolvable:$true] %s185_s19 }
   0xc   :  { %v32_v10 = vld [vmem:[#allocation3 + $0x1] sm:$0x1]   ;;  %10 = vst.msk [vmem:[#allocation2] sm:$0x1] %vm9_vm2, %v8_v11   ;;  %v38_v12 = vld [vmem:[#allocation3] sm:$0x1]   ;;  %p218_p1 = scmp.lt.s32.totalorder %s186_s19, %s186_s19 }
   0xd   :  { %v45_v13 = vld [vmem:[#allocation3 + $0x1] sm:$0x1]   ;;  %v51_v14 = vld [vmem:[#allocation3] sm:$0x1]   ;;  %s213_s20 = scalar_lea.vmem %s186_s19, 192 }
   0xe   :  { %76 = vrot.lane.b32.xlu0 %v75_v5, %s237_s9  ;;  %v58_v15 = vld [vmem:[#allocation3 + $0x1] sm:$0x1]   ;;  %v64_v17 = vld [vmem:[#allocation3] sm:$0x1]   ;;  %p214_p0 = scmp.ne.s32.totalorder %s186_s19, %s213_s20  ;;  %p219_p2 = scmp.lt.s32.totalorder %s213_s20, %s213_s20 }
   0xf   :  { %20 = vrot.lane.b32.xlu1 %v19_v8, %s238_s10 }
  0x10   :  { %p220_p3 = por %p219_p2, %p218_p1 }
  0x12   :  { %89 = vrot.lane.b32.xlu0 %v88_v9, %s239_s11  ;;  %p221_p4 = pnand %p220_p3, %p214_p0 }
  0x13   :  { %33 = vrot.lane.b32.xlu1 %v32_v10, %s240_s12  ;;  %v101_v16 = vld [vmem:[#allocation2] sm:$0x1] }
  0x14   :  { %104 = vst [vmem:[#allocation0] sm:$0x1] %v101_v16 }
  0x16   :  { %39 = vrot.lane.b32.xlu0 %v38_v12, %s241_s13 }
  0x17   :  { %46 = vrot.lane.b32.xlu1 %v45_v13, %s242_s14 }
  0x1a   :  { %52 = vrot.lane.b32.xlu0 %v51_v14, %s243_s15 }
  0x1b   :  { %59 = vrot.lane.b32.xlu1 %v58_v15, %s244_s16 }
  0x1e   :  { %65 = vrot.lane.b32.xlu0 %v64_v17, %s245_s17 }
  0x7c   :  { %v27_v18 = vpop.permute.xlu0 %26  }
  0x7d   :  { %30 = vst.msk [vmem:[#allocation2 + $0x8] sm:$0x1] %vm9_vm2, %v27_v18   ;;  %v14_v19 = vpop.permute.xlu1 %13  }
  0x7e   :  { %17 = vst.msk [vmem:[#allocation2 + $0x58] sm:$0x1] %vm9_vm2, %v14_v19  }
  0x80   :  { %v77_v20 = vpop.permute.xlu0 %76  }
  0x81   :  { %80 = vst.msk [vmem:[#allocation2 + $0x50] sm:$0x1] %vm78_vm3, %v77_v20   ;;  %v21_v21 = vpop.permute.xlu1 %20  }
  0x82   :  { %83 = vst.msk [vmem:[#allocation2 + $0x50] sm:$0x1] %vm81_vm4, %v77_v20  }
  0x83   :  { %24 = vst.msk [vmem:[#allocation2 + $0x30] sm:$0x1] %vm9_vm2, %v21_v21  }
  0x84   :  { %v106_v22 = vld [vmem:[#allocation2 + $0x8] sm:$0x1]  ;;  %v90_v23 = vpop.permute.xlu0 %89  }
  0x85   :  { %110 = vst [vmem:[#allocation0 + $0x1] sm:$0x1] %v106_v22  ;;  %v175_v24 = vld [vmem:[#allocation2 + $0x58] sm:$0x1]  ;;  %93 = vst.msk [vmem:[#allocation2 + $0x28] sm:$0x1] %vm91_vm5, %v90_v23   ;;  %v34_v25 = vpop.permute.xlu1 %33  }
  0x86   :  { %180 = vst [vmem:[#allocation0 + $0xb] sm:$0x1] %v175_v24  ;;  %96 = vst.msk [vmem:[#allocation2 + $0x28] sm:$0x1] %vm94_vm6, %v90_v23  }
  0x87   :  { %37 = vst.msk [vmem:[#allocation2 + $0x38] sm:$0x1] %vm9_vm2, %v34_v25  }
  0x88   :  { %v40_v26 = vpop.permute.xlu0 %39  }
  0x89   :  { %v168_v27 = vld [vmem:[#allocation2 + $0x50] sm:$0x1]  ;;  %43 = vst.msk [vmem:[#allocation2 + $0x10] sm:$0x1] %vm9_vm2, %v40_v26   ;;  %v47_v29 = vpop.permute.xlu1 %46  }
  0x8a   :  { %v140_v28 = vld [vmem:[#allocation2 + $0x30] sm:$0x1]  ;;  %173 = vst [vmem:[#allocation0 + $0xa] sm:$0x1] %v168_v27  ;;  %50 = vst.msk [vmem:[#allocation2 + $0x40] sm:$0x1] %vm9_vm2, %v47_v29  }
  0x8b   :  { %145 = vst [vmem:[#allocation0 + $0x6] sm:$0x1] %v140_v28 }
  0x8c   :  { %v53_v30 = vpop.permute.xlu0 %52  }
  0x8d   :  { %v133_v31 = vld [vmem:[#allocation2 + $0x28] sm:$0x1]  ;;  %56 = vst.msk [vmem:[#allocation2 + $0x18] sm:$0x1] %vm9_vm2, %v53_v30   ;;  %v60_v33 = vpop.permute.xlu1 %59  }
  0x8e   :  { %v147_v32 = vld [vmem:[#allocation2 + $0x38] sm:$0x1]  ;;  %138 = vst [vmem:[#allocation0 + $0x5] sm:$0x1] %v133_v31  ;;  %63 = vst.msk [vmem:[#allocation2 + $0x48] sm:$0x1] %vm9_vm2, %v60_v33  }
  0x8f   :  { %152 = vst [vmem:[#allocation0 + $0x7] sm:$0x1] %v147_v32 }
  0x90   :  { %v112_v34 = vld [vmem:[#allocation2 + $0x10] sm:$0x1]  ;;  %v66_v35 = vpop.permute.xlu0 %65  }
  0x91   :  { %117 = vst [vmem:[#allocation0 + $0x2] sm:$0x1] %v112_v34  ;;  %v154_v36 = vld [vmem:[#allocation2 + $0x40] sm:$0x1]  ;;  %69 = vst.msk [vmem:[#allocation2 + $0x20] sm:$0x1] %vm9_vm2, %v66_v35  }
  0x92   :  { %159 = vst [vmem:[#allocation0 + $0x8] sm:$0x1] %v154_v36 }
  0x94   :  { %v119_v37 = vld [vmem:[#allocation2 + $0x18] sm:$0x1] }
  0x95   :  { %124 = vst [vmem:[#allocation0 + $0x3] sm:$0x1] %v119_v37  ;;  %v161_v38 = vld [vmem:[#allocation2 + $0x48] sm:$0x1] }
  0x96   :  { %166 = vst [vmem:[#allocation0 + $0x9] sm:$0x1] %v161_v38 }
  0x98   :  { %v126_v39 = vld [vmem:[#allocation2 + $0x20] sm:$0x1] }
  0x99   :  { %131 = vst [vmem:[#allocation0 + $0x4] sm:$0x1] %v126_v39 }
  0x9a   :  { %224 = shalt.err (!%p221_p4)
}
  0x9b   :  { %188 = dma.vmem_to_hbm [thread:$0]  %s186_s19, 192, %s274_s1, [#allocation1]  }
  0x9c   :  { %233 = dma.done.wait [#allocation1], 192  }
  0x9d   :  { %234 = vsyncadd [#allocation1], 4294967104 }
  0x9e   :  { %190 = vsyncpa [#allocation1], 1 }

// kernel: squeeze.3
= control target key start
LH: loop header
LB: loop body
LE: loop exit
PB: predicated region body
PF: predicated region fallthrough
CT: control target
= control target key end

     0   :  { %s179_s0 = inlined_call_operand.vmem [shape: f32[288], index: 0, kind: input, shape index: {}]   ;;  %s180_s1 = inlined_call_operand.hbm [shape: f32[12,24], index: 1, kind: output, shape index: {}]  }
   0x1   :  { %v6_v0 = vld [vmem:[%s179_s0] sm:$0xf] }
   0x2   :  { %7 = vst [vmem:[#allocation2] sm:$0xf] %v6_v0 }
   0x3   :  { %2 = vsyncpa [#allocation1], 0  ;;  %vm74_vm0 = vcmask 916480   ;;  %s141_s0 = smov 104   ;;  %s142_s8 = smov 120   ;;  %vm87_vm1 = vcmask 982016  }
   0x4   :  { %s143_s9 = smov 16   ;;  %s144_s10 = smov 112   ;;  %vm9_vm2 = vcmask 195584   ;;  %vm78_vm3 = vcmask 130048   ;;  %vm81_vm4 = vcmask 195712   ;;  %vm91_vm5 = vcmask 64512  }
   0x5   :  { %s145_s11 = smov 8   ;;  %s146_s12 = smov 88   ;;  %vm94_vm6 = vcmask 195648  }
   0x6   :  { %s147_s13 = smov 80   ;;  %s148_s14 = smov 64  }
   0x7   :  { %s149_s15 = smov 56   ;;  %s150_s16 = smov 40  }
   0x8   :  { %s151_s17 = smov 32   ;;  %s152_s18 = smov [#allocation0]  }
   0x9   :  { %v25_v1 = vld [vmem:[#allocation2] sm:$0x1]   ;;  %v71_v2 = vld [vmem:[#allocation2 + $0x1] sm:$0x1]   ;;  %v73_v3 = vld [vmem:[#allocation2 + $0x2] sm:$0x1]  }
   0xa   :  { %26 = vrot.lane.b32.xlu0 %v25_v1, %s141_s0  ;;  %v12_v4 = vld [vmem:[#allocation2 + $0x2] sm:$0x1]   ;;  %v75_v5 = vsel %vm74_vm0, %v73_v3, %v71_v2  ;;  %v84_v6 = vld [vmem:[#allocation2] sm:$0x1]   ;;  %v86_v7 = vld [vmem:[#allocation2 + $0x1] sm:$0x1]  }
   0xb   :  { %13 = vrot.lane.b32.xlu1 %v12_v4, %s142_s8  ;;  %v19_v8 = vld [vmem:[#allocation2 + $0x1] sm:$0x1]   ;;  %v88_v9 = vsel %vm87_vm1, %v86_v7, %v84_v6  ;;  %v8_v11 = vld [vmem:[#allocation2] sm:$0x1]   ;;  %s101_s19 = sshll.u32 %s152_s18, 4  ;;  %s102_s19 = int_to_ptr.vmem [resolvable:$true] %s101_s19 }
   0xc   :  { %v32_v10 = vld [vmem:[#allocation2 + $0x1] sm:$0x1]   ;;  %10 = vst.msk [vmem:[#allocation0] sm:$0x1] %vm9_vm2, %v8_v11   ;;  %v38_v12 = vld [vmem:[#allocation2] sm:$0x1]   ;;  %p124_p1 = scmp.lt.s32.totalorder %s102_s19, %s102_s19 }
   0xd   :  { %v45_v13 = vld [vmem:[#allocation2 + $0x1] sm:$0x1]   ;;  %v51_v14 = vld [vmem:[#allocation2] sm:$0x1]   ;;  %s119_s20 = scalar_lea.vmem %s102_s19, 256 }
   0xe   :  { %76 = vrot.lane.b32.xlu0 %v75_v5, %s143_s9  ;;  %v58_v15 = vld [vmem:[#allocation2 + $0x1] sm:$0x1]   ;;  %v64_v16 = vld [vmem:[#allocation2] sm:$0x1]   ;;  %p120_p0 = scmp.ne.s32.totalorder %s102_s19, %s119_s20  ;;  %p125_p2 = scmp.lt.s32.totalorder %s119_s20, %s119_s20 }
   0xf   :  { %20 = vrot.lane.b32.xlu1 %v19_v8, %s144_s10 }
  0x10   :  { %p126_p3 = por %p125_p2, %p124_p1 }
  0x12   :  { %89 = vrot.lane.b32.xlu0 %v88_v9, %s145_s11  ;;  %p127_p4 = pnand %p126_p3, %p120_p0 }
  0x13   :  { %33 = vrot.lane.b32.xlu1 %v32_v10, %s146_s12 }
  0x16   :  { %39 = vrot.lane.b32.xlu0 %v38_v12, %s147_s13 }
  0x17   :  { %46 = vrot.lane.b32.xlu1 %v45_v13, %s148_s14 }
  0x1a   :  { %52 = vrot.lane.b32.xlu0 %v51_v14, %s149_s15 }
  0x1b   :  { %59 = vrot.lane.b32.xlu1 %v58_v15, %s150_s16 }
  0x1e   :  { %65 = vrot.lane.b32.xlu0 %v64_v16, %s151_s17 }
  0x7c   :  { %v27_v17 = vpop.permute.xlu0 %26  }
  0x7d   :  { %30 = vst.msk [vmem:[#allocation0 + $0x1] sm:$0x1] %vm9_vm2, %v27_v17   ;;  %v14_v18 = vpop.permute.xlu1 %13  }
  0x7e   :  { %17 = vst.msk [vmem:[#allocation0 + $0xb] sm:$0x1] %vm9_vm2, %v14_v18  }
  0x80   :  { %v77_v19 = vpop.permute.xlu0 %76  }
  0x81   :  { %80 = vst.msk [vmem:[#allocation0 + $0xa] sm:$0x1] %vm78_vm3, %v77_v19   ;;  %v21_v20 = vpop.permute.xlu1 %20  }
  0x82   :  { %83 = vst.msk [vmem:[#allocation0 + $0xa] sm:$0x1] %vm81_vm4, %v77_v19  }
  0x83   :  { %24 = vst.msk [vmem:[#allocation0 + $0x6] sm:$0x1] %vm9_vm2, %v21_v20  }
  0x84   :  { %v90_v21 = vpop.permute.xlu0 %89  }
  0x85   :  { %93 = vst.msk [vmem:[#allocation0 + $0x5] sm:$0x1] %vm91_vm5, %v90_v21   ;;  %v34_v22 = vpop.permute.xlu1 %33  }
  0x86   :  { %96 = vst.msk [vmem:[#allocation0 + $0x5] sm:$0x1] %vm94_vm6, %v90_v21  }
  0x87   :  { %37 = vst.msk [vmem:[#allocation0 + $0x7] sm:$0x1] %vm9_vm2, %v34_v22  }
  0x88   :  { %v40_v23 = vpop.permute.xlu0 %39  }
  0x89   :  { %43 = vst.msk [vmem:[#allocation0 + $0x2] sm:$0x1] %vm9_vm2, %v40_v23   ;;  %v47_v24 = vpop.permute.xlu1 %46  }
  0x8a   :  { %50 = vst.msk [vmem:[#allocation0 + $0x8] sm:$0x1] %vm9_vm2, %v47_v24  }
  0x8c   :  { %v53_v25 = vpop.permute.xlu0 %52  }
  0x8d   :  { %56 = vst.msk [vmem:[#allocation0 + $0x3] sm:$0x1] %vm9_vm2, %v53_v25   ;;  %v60_v26 = vpop.permute.xlu1 %59  }
  0x8e   :  { %63 = vst.msk [vmem:[#allocation0 + $0x9] sm:$0x1] %vm9_vm2, %v60_v26  }
  0x90   :  { %v66_v27 = vpop.permute.xlu0 %65  }
  0x91   :  { %69 = vst.msk [vmem:[#allocation0 + $0x4] sm:$0x1] %vm9_vm2, %v66_v27  }
  0x92   :  { %130 = shalt.err (!%p127_p4)
}
  0x93   :  { %104 = dma.vmem_to_hbm [thread:$0]  %s102_s19, 256, %s180_s1, [#allocation1]  }
  0x94   :  { %139 = dma.done.wait [#allocation1], 256  }
  0x95   :  { %140 = vsyncadd [#allocation1], 4294967040 }
  0x96   :  { %106 = vsyncpa [#allocation1], 1 }

// kernel: revin_norm.1
= control target key start
LH: loop header
LB: loop body
LE: loop exit
PB: predicated region body
PF: predicated region fallthrough
CT: control target
= control target key end

     0   :  { %s384_s12 = smov 0   ;;  %s415_s0 = inlined_call_operand.vmem [shape: f32[4,384], index: 0, kind: input, shape index: {}]   ;;  %s416_s1 = inlined_call_operand.vmem [shape: f32[2,384], index: 1, kind: input, shape index: {}]   ;;  %s417_s2 = inlined_call_operand.vmem [shape: f32[4,384], index: 2, kind: output, shape index: {0}]   ;;  %s418_s3 = inlined_call_operand.vmem [shape: f32[2,384], index: 3, kind: output, shape index: {1}]  }
   0x1 LB: > { %s335_s13 = sadd.s32 4294967295, %s362_s12   ;;  %p339_p0 = scmp.ge.s32.totalorder %s362_s12, 1  ;;  %s362_s12 = sphi %s384_s12, %s14_s12  }
   0x2   : > { %p148_p1 = scmp.lt.s32.totalorder %s362_s12, 4 }
   0x4   : > { %p149_p2 = pnand %p339_p0, %p148_p1 }
   0x5   : > { %p178_p3 = scmp.lt.s32.totalorder (!%p149_p2), %s335_s13, 2 }
   0x6   : > { %152 = sbr.rel (%p149_p2) target bundleno = 78 (0x4e), region = 28 }
   0xb   : > { %s420_s13 = smov (!%p178_p3, %s335_s13), 2  ;;  %vm196_vm0 = vcmask 1043456   ;;  %vm236_vm1 = vcmask 1040384   ;;  %v225_v21 = vlaneseq }
   0xc   : > { %s340_s14 = sshll.u32 %s420_s13, 2  ;;  %s341_s18 = sshll.u32 %s420_s13, 1 }
   0xd   : > { %s181_s17 = scalar_lea.vmem %s415_s0, %s340_s14  ;;  %s193_s21 = scalar_lea.vmem %s418_s3, %s341_s18  ;;  %v226_v22 = vshrl.u32 %v225_v21, 7 }
   0xe   : > { %v194_v0 = vld [vmem:[%s181_s17] sm:$0xf]  ;;  %s185_s24 = scalar_lea.vmem %s416_s1, %s341_s18  ;;  %s189_s27 = scalar_lea.vmem %s417_s2, %s340_s14 }
   0xf   : > { %v197_v1 = vsel %vm196_vm0, %v194_v0, 0.0  ;;  %v195_v23 = vld [vmem:[%s185_s24] sm:$0x3]  ;;  %v227_v24 = vsub.s32 0, %v226_v22  ;;  %v232_v30 = vsub.s32 1, %v226_v22 }
  0x10   : > { %v198_v2 = vrot.slane %v197_v1, 4 }
  0x12   : > { %v199_v3 = vadd.f32 %v198_v2, %v197_v1 }
  0x14   : > { %v200_v4 = vrot.slane %v199_v3, 2 }
  0x16   : > { %v201_v5 = vadd.f32 %v200_v4, %v199_v3 }
  0x18   : > { %v202_v6 = vrot.slane %v201_v5, 1 }
  0x1a   : > { %v203_v7 = vadd.f32 %v202_v6, %v201_v5 }
  0x1c   : > { %v205_v8 = vmul.f32 0.25, %v203_v7 }
  0x1e   : > { %v206_v9 = vsub.f32 %v194_v0, %v205_v8 }
  0x20   : > { %v207_v10 = vand.u32 2147483647, %v206_v9 }
  0x22   : > { %v208_v11 = vsel %vm196_vm0, %v207_v10, 0.0 }
  0x23   : > { %v209_v12 = vrot.slane %v208_v11, 4 }
  0x25   : > { %v210_v13 = vadd.f32 %v209_v12, %v208_v11 }
  0x27   : > { %v211_v14 = vrot.slane %v210_v13, 2 }
  0x29   : > { %v212_v15 = vadd.f32 %v211_v14, %v210_v13 }
  0x2b   : > { %v213_v16 = vrot.slane %v212_v15, 1 }
  0x2d   : > { %v214_v17 = vadd.f32 %v213_v16, %v212_v15 }
  0x2f   : > { %v215_v18 = vmul.f32 0.25, %v214_v17 }
  0x31   : > { %v216_v19 = vadd.f32 1e-05, %v215_v18 }
  0x33   : > { %354 = vrcp.f32 %v216_v19  ;;  %v237_v20 = vsel %vm236_vm1, %v205_v8, %v216_v19 }
  0x34   : > { %238 = vst [vmem:[%s193_s21] sm:$0x3] %v237_v20 }
  0x40   : > { %v355_v25 = vpop.eup %354 }
  0x41   : > { %v219_v26 = vmul.f32 %v355_v25, %v195_v23 }
  0x43   : > { %v220_v27 = vmul.f32 %v219_v26, %v205_v8  ;;  %v228_v28 = vrot.slane %v219_v26, %v227_v24 }
  0x45   : > { %v222_v29 = vrot.slane %v220_v27, 7  ;;  %v229_v32 = vmul.f32 %v228_v28, %v194_v0 }
  0x47   : > { %v224_v31 = vsub.f32 %v195_v23, %v222_v29 }
  0x49   : > { %v233_v33 = vrot.slane %v224_v31, %v232_v30 }
  0x4b   : > { %v234_v34 = vadd.f32 %v233_v33, %v229_v32 }
  0x4d   : > { %235 = vst [vmem:[%s189_s27] sm:$0xf] %v234_v34 }
  0x4e PF: > { %s14_s12 = sadd.s32 1, %s362_s12  }
  0x4f   : > { %p11_p4 = scmp.ge.s32.totalorder %s14_s12, 5  }
  0x51   :  { %13 = sbr.rel (!%p11_p4) target bundleno = 1 (0x1), region = 73 }

</bundles_post_ra>
